<compile_context>
chip_gen: v6e
topology: v6e:2x2x1
jax: 0.10.0
libtpu: 0.0.40
codegen_flags: <defaults>
</compile_context>

<pallas_src>
import functools

import jax
import jax.numpy as jnp
from jax import lax
from jax.experimental import pallas as pl
from jax.experimental.pallas import tpu as pltpu


def _gap_kernel(x_ref, o_ref, acc_ref, *, inv_hw, hw_total, hw_tile, mask_tail):
    """x_ref: (ROW_TILE, HW_TILE); o_ref: (ROW_TILE, 1); acc_ref: (ROW_TILE, 1) f32."""
    k = pl.program_id(1)

    @pl.when(k == 0)
    def _():
        acc_ref[...] = jnp.zeros_like(acc_ref)

    x = x_ref[...]
    if mask_tail:
        # HW is not a multiple of hw_tile: the last HW tile reads past the end
        # of the row, so zero the out-of-range columns.  The compare is
        # all-true on interior tiles (cheap VPU filler on an HBM-bound kernel).
        col = k * hw_tile + lax.broadcasted_iota(jnp.int32, x.shape, 1)
        x = jnp.where(col < hw_total, x, jnp.zeros_like(x))

    # Fused upcast-in-reduce: accumulate in f32 (matches torch's f32-accumulated
    # mean for bf16 inputs) without materializing an f32 copy of the block.
    acc_ref[...] += jnp.sum(x, axis=1, keepdims=True, dtype=jnp.float32)

    @pl.when(k == pl.num_programs(1) - 1)
    def _():
        o_ref[...] = (acc_ref[...] * inv_hw).astype(o_ref.dtype)


def _round_up(x, m):
    return (x + m - 1) // m * m


def _tpu_info():
    try:
        return pltpu.get_tpu_info()
    except Exception:
        return None


def _vmem_capacity_bytes():
    info = _tpu_info()
    cap = getattr(info, "vmem_capacity_bytes", None) if info is not None else None
    if isinstance(cap, int) and cap > 0:
        return cap
    return 64 << 20  # conservative fallback (smallest generation: v7x)


def _tensorcores_per_chip():
    info = _tpu_info()
    if info is None:
        return 1
    for attr in ("tensorcores_per_chip", "num_tensorcores", "num_cores"):
        v = getattr(info, attr, None)
        if isinstance(v, int) and v > 0:
            return v
    # Heuristic fallback: v7x (the only 2-TC generation) is also the only one
    # with 64 MiB VMEM per TensorCore; v5e/v6e have 128 MiB and a single TC.
    cap = getattr(info, "vmem_capacity_bytes", 128 << 20)
    return 2 if isinstance(cap, int) and cap <= (64 << 20) else 1


def _pick_tiles(n_rows, hw, itemsize, block_budget, num_tc):
    """Choose (row_tile, hw_tile, mask_tail).

    All sizing uses the *padded* VMEM footprint (sublanes rounded to 8, lanes
    to 128) so the budget matches what Mosaic actually allocates.
    """
    rows_pad = _round_up(n_rows, 8)
    hw_pad = _round_up(hw, 128)

    strip_bytes = 8 * hw_pad * itemsize  # one 8-row strip over the full (padded) HW

    if strip_bytes <= block_budget:
        # Whole spatial extent per step (single reduction step); fill the
        # budget with rows.
        hw_tile = hw                               # == full array dim, no mask needed
        rows_fit = max(8, (block_budget // strip_bytes) * 8)
        row_tile = min(rows_fit, rows_pad)
        mask_tail = False
        # On 2-TC parts the "parallel" row axis is sharded across cores: make
        # sure there are at least two row tiles when there is enough work.
        # (On 1-TC v5e/v6e this split would be pure per-step overhead.)
        if num_tc >= 2 and rows_pad >= 16 and rows_pad <= row_tile:
            row_tile = _round_up(pl.cdiv(rows_pad, 2), 8)
    else:
        # Spatial extent too large for one step even at 8 rows: keep 8 rows per
        # block (longest contiguous DMA runs) and fill the budget along the
        # lane axis with a 128-multiple tile; the partial tail tile is masked
        # inside the kernel instead of falling back to a full-HW block.
        row_tile = 8
        hw_tile = max(128, (block_budget // (8 * itemsize)) // 128 * 128)
        if hw_tile >= hw:
            hw_tile = hw
            mask_tail = False
        else:
            mask_tail = (hw % hw_tile) != 0

    return row_tile, hw_tile, mask_tail


def global_avg_pooling(x, *, block_budget=None, vmem_limit=None):
    """x: (N, C, H, W) float array -> (N, C) mean over spatial dims."""
    N, C, H, W = x.shape
    R, HW = N * C, H * W
    inv_hw = float(1.0 / HW)

    # Free view: no transpose, no extra HBM pass. One row per (n, c) pair.
    x2 = x.reshape(R, HW)
    itemsize = x2.dtype.itemsize

    capacity = _vmem_capacity_bytes()
    num_tc = _tensorcores_per_chip()
    if block_budget is None:
        # ~16 MiB blocks on 128 MiB-VMEM parts (v5e/v6e), ~8 MiB on v7x (64 MiB).
        block_budget = max(2 << 20, capacity // 8)

    row_tile, hw_tile, mask_tail = _pick_tiles(R, HW, itemsize, block_budget, num_tc)
    n_row_tiles = pl.cdiv(R, row_tile)
    n_hw_tiles = pl.cdiv(HW, hw_tile)
    out_rows = n_row_tiles * row_tile      # padded rows hold garbage; sliced off below

    # VMEM accounting with *padded* tile footprints (lanes -> 128, sublanes -> 8):
    # 2x double-buffered input block + 2x output block + f32 scratch + headroom
    # for compiler-internal scratch.
    in_block_bytes = _round_up(row_tile, 8) * _round_up(hw_tile, 128) * itemsize
    out_block_bytes = _round_up(row_tile, 8) * 128 * itemsize
    scratch_bytes = _round_up(row_tile, 8) * 128 * 4
    if vmem_limit is None:
        needed = 2 * in_block_bytes + 2 * out_block_bytes + scratch_bytes + (4 << 20)
        vmem_limit = int(min(capacity * 7 // 10, max(32 << 20, needed)))

    out = pl.pallas_call(
        functools.partial(
            _gap_kernel,
            inv_hw=inv_hw,
            hw_total=HW,
            hw_tile=hw_tile,
            mask_tail=mask_tail,
        ),
        out_shape=jax.ShapeDtypeStruct((out_rows, 1), x.dtype),
        grid_spec=pltpu.PrefetchScalarGridSpec(
            num_scalar_prefetch=0,
            grid=(n_row_tiles, n_hw_tiles),   # reduction (HW) axis last
            in_specs=[pl.BlockSpec((row_tile, hw_tile), lambda r, k: (r, k))],
            out_specs=pl.BlockSpec((row_tile, 1), lambda r, k: (r, 0)),
            scratch_shapes=[pltpu.VMEM((row_tile, 1), jnp.float32)],
        ),
        compiler_params=pltpu.CompilerParams(
            dimension_semantics=("parallel", "arbitrary"),
            vmem_limit_bytes=int(vmem_limit),
        ),
    )(x2)

    return out[:R, 0].reshape(N, C)


if __name__ == "__main__":
    key = jax.random.PRNGKey(0)

    # Primary check: the module's shape (batch=2, channels=4, spatial=16).
    N, C, H, W = 2, 4, 16, 16
    x = jax.random.normal(key, (N, C, H, W), dtype=jnp.float32)
    y = global_avg_pooling(x)
    jax.block_until_ready(y)
    y_ref = jnp.mean(x, axis=(2, 3))
    assert y.shape == (N, C)
    assert jnp.allclose(y, y_ref, atol=1e-5, rtol=1e-5), float(jnp.max(jnp.abs(y - y_ref)))

    # Secondary check: force the tiled-HW + masked-tail path (HW=1000 with a
    # tiny block budget -> hw_tile=512, two reduction steps, tail mask).
    k2 = jax.random.PRNGKey(1)
    x2 = jax.random.normal(k2, (1, 8, 25, 40), dtype=jnp.float32)
    y2 = global_avg_pooling(x2, block_budget=16 << 10)
    jax.block_until_ready(y2)
    y2_ref = jnp.mean(x2, axis=(2, 3))
    assert jnp.allclose(y2, y2_ref, atol=1e-5, rtol=1e-5), float(jnp.max(jnp.abs(y2 - y2_ref)))

    print("KERNEL_OK")
</pallas_src>

<mosaic_0001>
module attributes {stable_mosaic.version = 11 : i64} {
  func.func @_gap_kernel(%arg0: i32, %arg1: i32, %arg2: memref<8x256xf32, #tpu.memory_space<vmem>>, %arg3: memref<8x1xf32, #tpu.memory_space<vmem>>, %arg4: memref<8x1xf32, #tpu.memory_space<vmem>>) attributes {dimension_semantics = [#tpu.dimension_semantics<parallel>, #tpu.dimension_semantics<arbitrary>], iteration_bounds = array<i64: 1, 1>, scalar_prefetch = 0 : i64, scratch_operands = 1 : i64, tpu.core_type = #tpu.core_type<tc>, window_params = [{transform_indices = @transform_0, window_bounds = array<i64: 8, 256>}, {transform_indices = @transform_1, window_bounds = array<i64: 8, 1>}]} {
    %c0_i32 = arith.constant 0 : i32
    %0 = arith.cmpi eq, %arg1, %c0_i32 : i32
    %1 = arith.extui %0 : i1 to i32
    %c0_i32_0 = arith.constant 0 : i32
    %2 = arith.cmpi ne, %1, %c0_i32_0 : i32
    scf.if %2 {
      %cst_8 = arith.constant 0.000000e+00 : f32
      %12 = vector.broadcast %cst_8 : f32 to vector<8x1xf32>
      %c0_9 = arith.constant 0 : index
      %c0_10 = arith.constant 0 : index
      %13 = vector.load %arg4[%c0_9, %c0_10] : memref<8x1xf32, #tpu.memory_space<vmem>>, vector<8x1xf32>
      tpu.vector_store %arg4[%c0_9, %c0_10], %12 {strides = array<i32>} : memref<8x1xf32, #tpu.memory_space<vmem>>, vector<8x1xf32>,
    } else {
    }
    %c0 = arith.constant 0 : index
    %c0_1 = arith.constant 0 : index
    %3 = vector.load %arg2[%c0, %c0_1] : memref<8x256xf32, #tpu.memory_space<vmem>>, vector<8x256xf32>
    %c0_2 = arith.constant 0 : index
    %c0_3 = arith.constant 0 : index
    %4 = vector.load %arg4[%c0_2, %c0_3] : memref<8x1xf32, #tpu.memory_space<vmem>>, vector<8x1xf32>
    %cst = arith.constant dense<0.000000e+00> : vector<8xf32>
    %5 = vector.multi_reduction <add>, %3, %cst [1] : vector<8x256xf32> to vector<8xf32>
    %6 = vector.shape_cast %5 : vector<8xf32> to vector<8x1xf32>
    %7 = arith.addf %4, %6 : vector<8x1xf32>
    %c0_4 = arith.constant 0 : index
    %c0_5 = arith.constant 0 : index
    %8 = vector.load %arg4[%c0_4, %c0_5] : memref<8x1xf32, #tpu.memory_space<vmem>>, vector<8x1xf32>
    tpu.vector_store %arg4[%c0_4, %c0_5], %7 {strides = array<i32>} : memref<8x1xf32, #tpu.memory_space<vmem>>, vector<8x1xf32>,
    %c0_i32_6 = arith.constant 0 : i32
    %9 = arith.cmpi eq, %arg1, %c0_i32_6 : i32
    %10 = arith.extui %9 : i1 to i32
    %c0_i32_7 = arith.constant 0 : i32
    %11 = arith.cmpi ne, %10, %c0_i32_7 : i32
    scf.if %11 {
      %c0_8 = arith.constant 0 : index
      %c0_9 = arith.constant 0 : index
      %12 = vector.load %arg4[%c0_8, %c0_9] : memref<8x1xf32, #tpu.memory_space<vmem>>, vector<8x1xf32>
      %cst_10 = arith.constant 3.906250e-03 : f32
      %13 = vector.broadcast %cst_10 : f32 to vector<8x1xf32>
      %14 = arith.mulf %12, %13 : vector<8x1xf32>
      %c0_11 = arith.constant 0 : index
      %c0_12 = arith.constant 0 : index
      %15 = vector.load %arg3[%c0_11, %c0_12] : memref<8x1xf32, #tpu.memory_space<vmem>>, vector<8x1xf32>
      tpu.vector_store %arg3[%c0_11, %c0_12], %14 {strides = array<i32>} : memref<8x1xf32, #tpu.memory_space<vmem>>, vector<8x1xf32>,
    } else {
    }
    return
  }
  func.func @transform_0(%arg0: i32, %arg1: i32) -> (i32, i32) {
    %c0_i32 = arith.constant 0 : i32
    return %arg0, %arg1 : i32, i32
  }
  func.func @transform_1(%arg0: i32, %arg1: i32) -> (i32, i32) {
    %c0_i32 = arith.constant 0 : i32
    %c0_i32_0 = arith.constant 0 : i32
    return %arg0, %c0_i32 : i32, i32
  }
}

</mosaic_0001>

<bundles_post_ra>
// kernel: tpu_custom_call.1
= control target key start
LH: loop header
LB: loop body
LE: loop exit
PB: predicated region body
PF: predicated region fallthrough
CT: control target
= control target key end

     0   :  { %6 = vsyncpa [#allocation4], 0  ;;  %s70_s6 = smov [#allocation3]   ;;  %s88_s0 = inlined_call_operand.hbm [shape: f32[8,256], index: 0, kind: input, shape index: {}]   ;;  %s89_s1 = inlined_call_operand.vmem [shape: f32[8,1], index: 1, kind: output, shape index: {}]  }
   0x1   :  { %s13_s7 = sshll.u32 %s70_s6, 4  ;;  %s14_s7 = int_to_ptr.vmem [resolvable:$true] %s13_s7 }
   0x2   :  { %s56_s8 = scalar_lea.vmem %s14_s7, 256  ;;  %p61_p1 = scmp.lt.s32.totalorder %s14_s7, %s14_s7 }
   0x3   :  { %p57_p0 = scmp.ne.s32.totalorder %s14_s7, %s56_s8  ;;  %p62_p2 = scmp.lt.s32.totalorder %s56_s8, %s56_s8 }
   0x5   :  { %p63_p3 = por %p62_p2, %p61_p1 }
   0x7   :  { %p64_p4 = pnand %p63_p3, %p57_p0 }
   0x9   :  { %67 = shalt.err (!%p64_p4)
}
   0xa   :  { %16 = dma.hbm_to_vmem [thread:$0]  %s88_s0, 256, %s14_s7, [#allocation4]  }
   0xb   :  { %68 = dma.done.wait [#allocation4], 256  }
   0xc   :  { %69 = vsyncadd [#allocation4], 4294967040  ;;  %vm24_vm0 = vcmask 7168   ;;  %v71_v0 = vmov 0.0   ;;  %v26_v1 = vld [vmem:[#allocation3] sm:$0xff]  ;;  %v27_v2 = vld [vmem:[#allocation3 + $0x8] sm:$0xff] }
   0xd   :  { %25 = vst.msk [vmem:[#allocation2] sm:$0xff] %vm24_vm0, %v71_v0  ;;  %v29_v3 = vadd.f32 %v27_v2, %v26_v1 }
   0xf   :  { %30 = vadd.xlane.f32.xlu0 %v29_v3 }
  0x14   :  { %v28_v4 = vld [vmem:[#allocation2] sm:$0xff] }
  0x98   :  { %v31_v5 = vpop.xlane.xlu0 %30 }
  0x99   :  { %v32_v6 = vadd.f32 %v31_v5, %v28_v4 }
  0x9b   :  { %34 = vst.msk [vmem:[#allocation2] sm:$0xff] %vm24_vm0, %v32_v6 }
  0xa2   :  { %v38_v7 = vld [vmem:[#allocation2] sm:$0xff] }
  0xa3   :  { %v39_v8 = vmul.f32 0.00390625, %v38_v7 }
  0xa5   :  { %40 = vst.msk [vmem:[%s89_s1] sm:$0xff] %vm24_vm0, %v39_v8 }
  0xa6   :  { %45 = vsyncpa [#allocation4], 1 }

</bundles_post_ra>
